<compile_context>
chip_gen: v6e
topology: v6e:2x2x1
jax: 0.10.0
libtpu: 0.0.40
codegen_flags: <defaults>
</compile_context>

<pallas_src>
import numpy as np
import jax
import jax.numpy as jnp
from jax.experimental import pallas as pl
from jax.experimental.pallas import tpu as pltpu

# ----------------------- small, module-consistent sizes ---------------------
B = 4            # batch
DIN = 12         # input_dim
DOUT = 6         # output_dim
SIGN = 16        # sign_size
CI = 4           # cha_input
CH = 8           # cha_hidden
K = 2
S1 = SIGN                 # sign_size1
S2 = SIGN // 2            # sign_size2
S3 = SIGN // 4            # length after final AvgPool1d
CIK = CI * K
HID = SIGN * CI           # hidden_size = 64
OUTSZ = S3 * CH           # output_size = 32
EPS = 1e-5

LANE = 128                # lane width of every activation / weight slab
N_MATS = 6                # number of folded (LANE, LANE) matrices
ONE_LANE = LANE - 1       # lane that carries the constant 1.0 (bias folding)
B23_ROW = 64              # unused row of plane 0 that stashes the stage-2 bias


# ------------------------------- the kernel ---------------------------------
def soft_ordering_kernel(x_ref, w_ref, out_ref):
    """x_ref: (BBLK, LANE) f32   w_ref: (N_MATS, LANE, LANE) bf16
       out_ref: (BBLK, LANE) f32."""
    f32 = jnp.float32
    bf16 = jnp.bfloat16

    def mm(a, i):
        # bf16 MXU operands, f32 accumulation; element-wise math stays f32.
        return jnp.dot(a.astype(bf16), w_ref[i], preferred_element_type=f32)

    # stage 0: bn1 + dense1 folded (bias via constant-1 lane), CELU(alpha=1)
    w0 = w_ref[0]                                             # (LANE, LANE)
    h = jnp.dot(x_ref[...].astype(bf16), w0, preferred_element_type=f32)
    h = jnp.where(h > 0, h, jnp.exp(h) - 1.0)

    # stage 1: bn_c1 + conv1 (grouped depthwise, k=5, pad=2) folded, ReLU
    # (bias row folded into the matrix; output uses all 128 lanes)
    z1 = jnp.maximum(mm(h, 1), 0.0)

    # stage 2 (merged on host): AdaptiveAvgPool(S1->S2) + bn_c2 + conv2.
    # Its input occupies all 128 lanes, so this is the single explicit bias
    # add; the bias row (plus the constant-lane regenerator) is stashed in an
    # unused, zero-multiplied row of weight plane 0.
    b23 = w0[B23_ROW:B23_ROW + 1, :].astype(f32)              # (1, LANE)
    z3 = jnp.maximum(mm(z1, 2) + b23, 0.0)

    # stage 3: bn_c3 + conv3 (k=3, pad=1) folded (bias via constant lane), ReLU
    z4 = jnp.maximum(mm(z3, 3), 0.0)

    # stage 4: bn_c4 + conv4 (depthwise, k=5, pad=2) folded (bias via const lane)
    z5 = mm(z4, 4)

    # residual add + ReLU (constant lane: z5[:,127]==0, z3[:,127]==1 -> 1)
    z6 = jnp.maximum(z5 + z3, 0.0)

    # stage 5: AvgPool1d(4,2,1) + Flatten + bn2 + dense2 folded (bias via const)
    out_ref[...] = mm(z6, 5)


# ------------------------------- wrapper -------------------------------------
def soft_ordering_forward(x, w_slab):
    b = x.shape[0]
    # Accept arbitrary batch in one call: small batches -> one grid point;
    # large batches -> batch-block grid with parallel semantics (2nd TC on v7x).
    if b <= LANE:
        bpad = max(8, ((b + 7) // 8) * 8)
        bblk = bpad
    else:
        bpad = ((b + LANE - 1) // LANE) * LANE
        bblk = LANE
    nblk = bpad // bblk

    xp = jnp.zeros((bpad, LANE), jnp.float32)
    xp = xp.at[:b, :DIN].set(x.astype(jnp.float32))
    xp = xp.at[:, ONE_LANE].set(1.0)      # constant-1 lane used for bias folding

    flops = 2 * bpad * LANE * LANE * N_MATS
    bytes_accessed = int(xp.size * 4
                         + w_slab.size * w_slab.dtype.itemsize
                         + bpad * LANE * 4)
    cost = pl.CostEstimate(flops=flops,
                           transcendentals=bpad * LANE,
                           bytes_accessed=bytes_accessed)

    out = pl.pallas_call(
        soft_ordering_kernel,
        out_shape=jax.ShapeDtypeStruct((bpad, LANE), jnp.float32),
        grid=(nblk,),
        in_specs=[
            pl.BlockSpec((bblk, LANE), lambda i: (i, 0)),
            pl.BlockSpec((N_MATS, LANE, LANE), lambda i: (0, 0, 0)),
        ],
        out_specs=pl.BlockSpec((bblk, LANE), lambda i: (i, 0)),
        compiler_params=pltpu.CompilerParams(
            dimension_semantics=("parallel",)),
        cost_estimate=cost,
    )(xp, w_slab)
    return out[:b, :DOUT]


# --------------------- deterministic parameter construction ------------------
def make_params(key):
    ks = iter(jax.random.split(key, 40))

    def nrm(shape, scale=0.3):
        return jax.random.normal(next(ks), shape, jnp.float32) * scale

    def uni(shape, lo, hi):
        return jax.random.uniform(next(ks), shape, jnp.float32, lo, hi)

    raw = {}
    # weight_norm(dense, dim=0): w = g * v / ||v||_row
    v = nrm((HID, DIN)); g = uni((HID,), 0.5, 1.5)
    raw['w_dense1'] = v * (g / jnp.sqrt(jnp.sum(v * v, axis=1)))[:, None]

    # weight_norm(conv, dim=None): w = g * v / ||v||_F (scalar g)
    def wn_all(shape):
        vv = nrm(shape); gg = uni((), 0.5, 1.5)
        return vv * (gg / jnp.sqrt(jnp.sum(vv * vv)))

    raw['w_conv1'] = wn_all((CIK, 1, 5))     # grouped, groups=CI
    raw['w_conv2'] = wn_all((CH, CIK, 3))
    raw['w_conv3'] = wn_all((CH, CH, 3))
    raw['w_conv4'] = wn_all((CH, 1, 5))      # depthwise, groups=CH

    v = nrm((DOUT, OUTSZ)); g = uni((DOUT,), 0.5, 1.5)
    raw['w_dense2'] = v * (g / jnp.sqrt(jnp.sum(v * v, axis=1)))[:, None]

    # BatchNorm params (gamma, beta, running_mean, running_var) — eval mode
    def bn(n):
        return (uni((n,), 0.5, 1.5), nrm((n,), 0.1),
                nrm((n,), 0.1), uni((n,), 0.5, 1.5))

    for name, n in [('bn1', DIN), ('bn_c1', CI), ('bn_c2', CIK),
                    ('bn_c3', CH), ('bn_c4', CH), ('bn2', OUTSZ)]:
        raw[name] = bn(n)
    return raw


# -------------------- host-side folding into one bf16 slab -------------------
def prep_kernel_args(raw):
    f64 = np.float64

    def bn_ss(name):
        g, b, m, v = (np.asarray(t, f64) for t in raw[name])
        s = g / np.sqrt(v + EPS)
        return s, b - m * s                      # scale, shift

    w_d1 = np.asarray(raw['w_dense1'], f64)      # (HID, DIN)
    w_c1 = np.asarray(raw['w_conv1'], f64)       # (CIK, 1, 5)
    w_c2 = np.asarray(raw['w_conv2'], f64)       # (CH, CIK, 3)
    w_c3 = np.asarray(raw['w_conv3'], f64)       # (CH, CH, 3)
    w_c4 = np.asarray(raw['w_conv4'], f64)       # (CH, 1, 5)
    w_d2 = np.asarray(raw['w_dense2'], f64)      # (DOUT, OUTSZ)

    s_bn1, b_bn1 = bn_ss('bn1')
    s_c1, b_c1 = bn_ss('bn_c1')
    s_c2, b_c2 = bn_ss('bn_c2')
    s_c3, b_c3 = bn_ss('bn_c3')
    s_c4, b_c4 = bn_ss('bn_c4')
    s_bn2, b_bn2 = bn_ss('bn2')

    # stage 0: bn1 folded into dense1
    W0 = s_bn1[:, None] * w_d1.T                             # (DIN, HID)
    bias0 = b_bn1 @ w_d1.T                                   # (HID,)

    # stage 1: bn_c1 + conv1 (grouped depthwise, k=5, pad=2)
    M1 = np.zeros((CI * S1, CIK * S1), f64)
    bias1 = np.zeros((CIK * S1,), f64)
    for o in range(CIK):
        g = o // K
        for m in range(S1):
            for k in range(5):
                l = m + k - 2
                if 0 <= l < S1:
                    M1[g * S1 + l, o * S1 + m] += w_c1[o, 0, k] * s_c1[g]
                    bias1[o * S1 + m] += w_c1[o, 0, k] * b_c1[g]

    # AdaptiveAvgPool1d(S1 -> S2, ratio 2) + bn_c2 (linear)
    M1p = np.zeros((CIK * S1, CIK * S2), f64)
    bias2 = np.zeros((CIK * S2,), f64)
    for o in range(CIK):
        for m in range(S2):
            M1p[o * S1 + 2 * m, o * S2 + m] = 0.5 * s_c2[o]
            M1p[o * S1 + 2 * m + 1, o * S2 + m] = 0.5 * s_c2[o]
            bias2[o * S2 + m] = b_c2[o]

    # conv2 (CIK -> CH, k=3, pad=1)
    M2 = np.zeros((CIK * S2, CH * S2), f64)
    for o in range(CH):
        for c in range(CIK):
            for m in range(S2):
                for k in range(3):
                    l = m + k - 1
                    if 0 <= l < S2:
                        M2[c * S2 + l, o * S2 + m] += w_c2[o, c, k]

    # MERGED stage 2 (done in f64): pool + bn_c2 + conv2
    W23 = M1p @ M2                                           # (CIK*S1, CH*S2)
    b23 = bias2 @ M2                                         # (CH*S2,)

    # stage 3: bn_c3 + conv3 (CH -> CH, k=3, pad=1)
    M3 = np.zeros((CH * S2, CH * S2), f64)
    bias3 = np.zeros((CH * S2,), f64)
    for o in range(CH):
        for c in range(CH):
            for m in range(S2):
                for k in range(3):
                    l = m + k - 1
                    if 0 <= l < S2:
                        M3[c * S2 + l, o * S2 + m] += w_c3[o, c, k] * s_c3[c]
                        bias3[o * S2 + m] += w_c3[o, c, k] * b_c3[c]

    # stage 4: bn_c4 + conv4 (depthwise CH, k=5, pad=2)
    M4 = np.zeros((CH * S2, CH * S2), f64)
    bias4 = np.zeros((CH * S2,), f64)
    for c in range(CH):
        for m in range(S2):
            for k in range(5):
                l = m + k - 2
                if 0 <= l < S2:
                    M4[c * S2 + l, c * S2 + m] += w_c4[c, 0, k] * s_c4[c]
                    bias4[c * S2 + m] += w_c4[c, 0, k] * b_c4[c]

    # stage 5: AvgPool1d(4,2,1, count_include_pad) + Flatten + bn2 + dense2
    P2 = np.zeros((CH * S2, CH * S3), f64)
    for c in range(CH):
        for m in range(S3):
            for l in range(2 * m - 1, 2 * m + 3):
                if 0 <= l < S2:
                    P2[c * S2 + l, c * S3 + m] = 0.25
    Wtail = P2 @ (s_bn2[:, None] * w_d2.T)                   # (CH*S2, DOUT)
    bias5 = b_bn2 @ w_d2.T                                   # (DOUT,)

    # --- pack into ONE lane-dense slab; biases folded via constant-1 lane ----
    w_slab = np.zeros((N_MATS, LANE, LANE), f64)
    # plane 0: bn1 + dense1
    w_slab[0, :DIN, :HID] = W0
    w_slab[0, ONE_LANE, :HID] = bias0
    w_slab[0, ONE_LANE, ONE_LANE] = 1.0          # keep the constant alive
    # stash stage-2 bias row in an unused row (x lane 64 is always 0):
    w_slab[0, B23_ROW, :CH * S2] = b23
    w_slab[0, B23_ROW, ONE_LANE] = 1.0           # regenerates the constant in z3
    # plane 1: bn_c1 + conv1  (output uses all 128 lanes -> bias row only)
    w_slab[1, :HID, :CIK * S1] = M1
    w_slab[1, ONE_LANE, :CIK * S1] = bias1
    # plane 2: merged pool + bn_c2 + conv2 (input uses all 128 lanes)
    w_slab[2, :CIK * S1, :CH * S2] = W23
    # plane 3: bn_c3 + conv3
    w_slab[3, :CH * S2, :CH * S2] = M3
    w_slab[3, ONE_LANE, :CH * S2] = bias3
    w_slab[3, ONE_LANE, ONE_LANE] = 1.0          # carry constant into z4
    # plane 4: bn_c4 + conv4 (constant column left 0; residual restores it)
    w_slab[4, :CH * S2, :CH * S2] = M4
    w_slab[4, ONE_LANE, :CH * S2] = bias4
    # plane 5: avgpool + bn2 + dense2
    w_slab[5, :CH * S2, :DOUT] = Wtail
    w_slab[5, ONE_LANE, :DOUT] = bias5

    # bf16 weight slab: halves the parameter DMA, native bf16 MXU path.
    return jnp.asarray(w_slab, jnp.bfloat16)


# ------------------------ plain-JAX reference (checking) ---------------------
def _conv1d(x, w, padding, groups):
    return jax.lax.conv_general_dilated(
        x, w, window_strides=(1,), padding=[(padding, padding)],
        dimension_numbers=('NCH', 'OIH', 'NCH'), feature_group_count=groups)


def reference_forward(x, raw):
    def bn(t, prm):
        g, b, m, v = prm
        shp = (1, -1) + (1,) * (t.ndim - 2)
        return ((t - m.reshape(shp)) / jnp.sqrt(v.reshape(shp) + EPS)
                * g.reshape(shp) + b.reshape(shp))

    x = bn(x, raw['bn1'])                              # dropout = identity (eval)
    x = x @ raw['w_dense1'].T
    x = jnp.where(x > 0, x, jnp.exp(x) - 1.0)          # CELU
    x = x.reshape(B, CI, S1)
    x = bn(x, raw['bn_c1'])
    x = jax.nn.relu(_conv1d(x, raw['w_conv1'], 2, CI))
    x = x.reshape(B, CIK, S2, 2).mean(-1)              # adaptive avg pool (ratio 2)
    x = bn(x, raw['bn_c2'])
    x = jax.nn.relu(_conv1d(x, raw['w_conv2'], 1, 1))
    xs = x
    x = bn(x, raw['bn_c3'])
    x = jax.nn.relu(_conv1d(x, raw['w_conv3'], 1, 1))
    x = bn(x, raw['bn_c4'])
    x = _conv1d(x, raw['w_conv4'], 2, CH)
    x = jax.nn.relu(x + xs)
    xp = jnp.pad(x, ((0, 0), (0, 0), (1, 1)))
    x = jnp.stack([xp[..., 2 * m:2 * m + 4].mean(-1) for m in range(S3)], axis=-1)
    x = x.reshape(B, OUTSZ)
    x = bn(x, raw['bn2'])
    return x @ raw['w_dense2'].T


# ----------------------------------- main ------------------------------------
if __name__ == "__main__":
    key = jax.random.PRNGKey(0)
    kx, kp = jax.random.split(key)
    x = jax.random.normal(kx, (B, DIN), jnp.float32)

    raw = make_params(kp)
    w_slab = prep_kernel_args(raw)

    out = jax.jit(soft_ordering_forward)(x, w_slab)
    out = jax.block_until_ready(out)

    ref = reference_forward(x, raw)
    assert out.shape == (B, DOUT)
    # Tolerance accounts for the bf16 weight slab / bf16 matmul operands
    # (f32 accumulation) across the 6-stage folded chain.
    np.testing.assert_allclose(np.asarray(out), np.asarray(ref),
                               rtol=3e-2, atol=3e-2)
    print("KERNEL_OK")
</pallas_src>

<mosaic_0001>
module attributes {stable_mosaic.version = 11 : i64} {
  func.func @soft_ordering_kernel(%arg0: i32, %arg1: memref<8x128xf32, #tpu.memory_space<vmem>>, %arg2: memref<6x128x128xbf16, #tpu.memory_space<vmem>>, %arg3: memref<8x128xf32, #tpu.memory_space<vmem>>) attributes {dimension_semantics = [#tpu.dimension_semantics<parallel>], iteration_bounds = array<i64: 1>, scalar_prefetch = 0 : i64, scratch_operands = 0 : i64, tpu.core_type = #tpu.core_type<tc>, window_params = [{transform_indices = @transform_0, window_bounds = array<i64: 8, 128>}, {pipeline_mode = #tpu.pipeline_mode<synchronous>, transform_indices = @transform_1, window_bounds = array<i64: 6, 128, 128>}, {transform_indices = @transform_2, window_bounds = array<i64: 8, 128>}]} {
    %c0 = arith.constant 0 : index
    %c0_0 = arith.constant 0 : index
    %c0_1 = arith.constant 0 : index
    %0 = vector.load %arg2[%c0, %c0_0, %c0_1] : memref<6x128x128xbf16, #tpu.memory_space<vmem>>, vector<1x128x128xbf16>
    %1 = vector.shape_cast %0 : vector<1x128x128xbf16> to vector<128x128xbf16>
    %c0_2 = arith.constant 0 : index
    %c0_3 = arith.constant 0 : index
    %2 = vector.load %arg1[%c0_2, %c0_3] : memref<8x128xf32, #tpu.memory_space<vmem>>, vector<8x128xf32>
    %3 = arith.truncf %2 : vector<8x128xf32> to vector<8x128xbf16>
    %cst = arith.constant dense<0.000000e+00> : vector<8x128xf32>
    %4 = tpu.matmul %3, %1, %cst {dimension_numbers = #tpu.dot_dimension_numbers<[1], [0], [0], [1], [0, 0, 1, 1], [], []>} : vector<8x128xbf16>, vector<128x128xbf16>, vector<8x128xf32> -> vector<8x128xf32>
    %cst_4 = arith.constant 0.000000e+00 : f32
    %5 = vector.broadcast %cst_4 : f32 to vector<8x128xf32>
    %6 = arith.cmpf ogt, %4, %5 : vector<8x128xf32>
    %7 = math.exp %4 : vector<8x128xf32>
    %cst_5 = arith.constant 1.000000e+00 : f32
    %8 = vector.broadcast %cst_5 : f32 to vector<8x128xf32>
    %9 = arith.subf %7, %8 : vector<8x128xf32>
    %10 = arith.select %6, %4, %9 : vector<8x128xi1>, vector<8x128xf32>
    %11 = arith.truncf %10 : vector<8x128xf32> to vector<8x128xbf16>
    %c1 = arith.constant 1 : index
    %c0_6 = arith.constant 0 : index
    %c0_7 = arith.constant 0 : index
    %12 = vector.load %arg2[%c1, %c0_6, %c0_7] : memref<6x128x128xbf16, #tpu.memory_space<vmem>>, vector<1x128x128xbf16>
    %13 = vector.shape_cast %12 : vector<1x128x128xbf16> to vector<128x128xbf16>
    %cst_8 = arith.constant dense<0.000000e+00> : vector<8x128xf32>
    %14 = tpu.matmul %11, %13, %cst_8 {dimension_numbers = #tpu.dot_dimension_numbers<[1], [0], [0], [1], [0, 0, 1, 1], [], []>} : vector<8x128xbf16>, vector<128x128xbf16>, vector<8x128xf32> -> vector<8x128xf32>
    %cst_9 = arith.constant 0.000000e+00 : f32
    %15 = vector.broadcast %cst_9 : f32 to vector<8x128xf32>
    %16 = arith.maximumf %14, %15 : vector<8x128xf32>
    %17 = vector.extract_strided_slice %1 {offsets = [64, 0], sizes = [1, 128], strides = [1, 1]} : vector<128x128xbf16> to vector<1x128xbf16>
    %18 = arith.extf %17 : vector<1x128xbf16> to vector<1x128xf32>
    %19 = arith.truncf %16 : vector<8x128xf32> to vector<8x128xbf16>
    %c2 = arith.constant 2 : index
    %c0_10 = arith.constant 0 : index
    %c0_11 = arith.constant 0 : index
    %20 = vector.load %arg2[%c2, %c0_10, %c0_11] : memref<6x128x128xbf16, #tpu.memory_space<vmem>>, vector<1x128x128xbf16>
    %21 = vector.shape_cast %20 : vector<1x128x128xbf16> to vector<128x128xbf16>
    %cst_12 = arith.constant dense<0.000000e+00> : vector<8x128xf32>
    %22 = tpu.matmul %19, %21, %cst_12 {dimension_numbers = #tpu.dot_dimension_numbers<[1], [0], [0], [1], [0, 0, 1, 1], [], []>} : vector<8x128xbf16>, vector<128x128xbf16>, vector<8x128xf32> -> vector<8x128xf32>
    %23 = vector.broadcast %18 : vector<1x128xf32> to vector<8x128xf32>
    %24 = arith.addf %22, %23 : vector<8x128xf32>
    %cst_13 = arith.constant 0.000000e+00 : f32
    %25 = vector.broadcast %cst_13 : f32 to vector<8x128xf32>
    %26 = arith.maximumf %24, %25 : vector<8x128xf32>
    %27 = arith.truncf %26 : vector<8x128xf32> to vector<8x128xbf16>
    %c3 = arith.constant 3 : index
    %c0_14 = arith.constant 0 : index
    %c0_15 = arith.constant 0 : index
    %28 = vector.load %arg2[%c3, %c0_14, %c0_15] : memref<6x128x128xbf16, #tpu.memory_space<vmem>>, vector<1x128x128xbf16>
    %29 = vector.shape_cast %28 : vector<1x128x128xbf16> to vector<128x128xbf16>
    %cst_16 = arith.constant dense<0.000000e+00> : vector<8x128xf32>
    %30 = tpu.matmul %27, %29, %cst_16 {dimension_numbers = #tpu.dot_dimension_numbers<[1], [0], [0], [1], [0, 0, 1, 1], [], []>} : vector<8x128xbf16>, vector<128x128xbf16>, vector<8x128xf32> -> vector<8x128xf32>
    %cst_17 = arith.constant 0.000000e+00 : f32
    %31 = vector.broadcast %cst_17 : f32 to vector<8x128xf32>
    %32 = arith.maximumf %30, %31 : vector<8x128xf32>
    %33 = arith.truncf %32 : vector<8x128xf32> to vector<8x128xbf16>
    %c4 = arith.constant 4 : index
    %c0_18 = arith.constant 0 : index
    %c0_19 = arith.constant 0 : index
    %34 = vector.load %arg2[%c4, %c0_18, %c0_19] : memref<6x128x128xbf16, #tpu.memory_space<vmem>>, vector<1x128x128xbf16>
    %35 = vector.shape_cast %34 : vector<1x128x128xbf16> to vector<128x128xbf16>
    %cst_20 = arith.constant dense<0.000000e+00> : vector<8x128xf32>
    %36 = tpu.matmul %33, %35, %cst_20 {dimension_numbers = #tpu.dot_dimension_numbers<[1], [0], [0], [1], [0, 0, 1, 1], [], []>} : vector<8x128xbf16>, vector<128x128xbf16>, vector<8x128xf32> -> vector<8x128xf32>
    %37 = arith.addf %36, %26 : vector<8x128xf32>
    %cst_21 = arith.constant 0.000000e+00 : f32
    %38 = vector.broadcast %cst_21 : f32 to vector<8x128xf32>
    %39 = arith.maximumf %37, %38 : vector<8x128xf32>
    %40 = arith.truncf %39 : vector<8x128xf32> to vector<8x128xbf16>
    %c5 = arith.constant 5 : index
    %c0_22 = arith.constant 0 : index
    %c0_23 = arith.constant 0 : index
    %41 = vector.load %arg2[%c5, %c0_22, %c0_23] : memref<6x128x128xbf16, #tpu.memory_space<vmem>>, vector<1x128x128xbf16>
    %42 = vector.shape_cast %41 : vector<1x128x128xbf16> to vector<128x128xbf16>
    %cst_24 = arith.constant dense<0.000000e+00> : vector<8x128xf32>
    %43 = tpu.matmul %40, %42, %cst_24 {dimension_numbers = #tpu.dot_dimension_numbers<[1], [0], [0], [1], [0, 0, 1, 1], [], []>} : vector<8x128xbf16>, vector<128x128xbf16>, vector<8x128xf32> -> vector<8x128xf32>
    %c0_25 = arith.constant 0 : index
    %c0_26 = arith.constant 0 : index
    %44 = vector.load %arg3[%c0_25, %c0_26] : memref<8x128xf32, #tpu.memory_space<vmem>>, vector<8x128xf32>
    tpu.vector_store %arg3[%c0_25, %c0_26], %43 {strides = array<i32>} : memref<8x128xf32, #tpu.memory_space<vmem>>, vector<8x128xf32>,
    return
  }
  func.func @transform_0(%arg0: i32) -> (i32, i32) {
    %c0_i32 = arith.constant 0 : i32
    %c0_i32_0 = arith.constant 0 : i32
    return %arg0, %c0_i32 : i32, i32
  }
  func.func @transform_1(%arg0: i32) -> (i32, i32, i32) {
    %c0_i32 = arith.constant 0 : i32
    %c0_i32_0 = arith.constant 0 : i32
    %c0_i32_1 = arith.constant 0 : i32
    %c0_i32_2 = arith.constant 0 : i32
    return %c0_i32, %c0_i32_0, %c0_i32_1 : i32, i32, i32
  }
  func.func @transform_2(%arg0: i32) -> (i32, i32) {
    %c0_i32 = arith.constant 0 : i32
    %c0_i32_0 = arith.constant 0 : i32
    return %arg0, %c0_i32 : i32, i32
  }
}

</mosaic_0001>

<bundles_post_ra>
// kernel: soft_ordering_forward.1
= control target key start
LH: loop header
LB: loop body
LE: loop exit
PB: predicated region body
PF: predicated region fallthrough
CT: control target
= control target key end

     0   :  { %7 = vsyncpa [#allocation3], 0  ;;  %s983_s9 = smov [#allocation2]   ;;  %s1076_s0 = inlined_call_operand.vmem [shape: f32[8,128], index: 0, kind: input, shape index: {}]   ;;  %s1077_s1 = inlined_call_operand.hbm [shape: bf16[6,128,128], index: 1, kind: input, shape index: {}]   ;;  %s1078_s2 = inlined_call_operand.vmem [shape: f32[8,128], index: 2, kind: output, shape index: {}]  }
   0x1   :  { %s15_s10 = sshll.u32 %s983_s9, 4  ;;  %s16_s10 = int_to_ptr.vmem [resolvable:$true] %s15_s10 }
   0x2   :  { %s969_s11 = scalar_lea.vmem %s16_s10, 6144  ;;  %p974_p1 = scmp.lt.s32.totalorder %s16_s10, %s16_s10 }
   0x3   :  { %p970_p0 = scmp.ne.s32.totalorder %s16_s10, %s969_s11  ;;  %p975_p2 = scmp.lt.s32.totalorder %s969_s11, %s969_s11 }
   0x5   :  { %p976_p3 = por %p975_p2, %p974_p1 }
   0x7   :  { %p977_p4 = pnand %p976_p3, %p970_p0 }
   0x9   :  { %980 = shalt.err (!%p977_p4)
}
   0xa   :  { %s984_s12 = smov 64   ;;  %s985_s13 = smov 4  }
   0xb   :  { %21 = dma.hbm_to_vmem [thread:$0]  %s1077_s1, 6144, %s16_s10, [#allocation3], %s984_s12, %s984_s12, %s985_s13  }
   0xc   :  { %981 = dma.done.wait [#allocation3], 6144  }
   0xd   :  { %982 = vsyncadd [#allocation3], 4294961152  ;;  %v986_v0 = vmov 0.0   ;;  %vm987_vm0 = vmmov 0   ;;  %v910_v1 = vld [vmem:[#allocation2 + $0x38] sm:$0xff]   ;;  %v911_v2 = vld [vmem:[#allocation2 + $0x30] sm:$0xff]   ;;  %v263_v57 = vlaneseq }
   0xe   :  { %785 = vmatprep.subr.bf16.mxu0 %v986_v0  ;;  %801 = vmatprep.mubr.msk.bf16.mxu0 %vm987_vm0, %v986_v0  ;;  %v912_v3 = vld [vmem:[#allocation2 + $0x28] sm:$0xff]   ;;  %v1014_v4 = vld [vmem:[#allocation2 + $0x20] sm:$0xff]   ;;  %v918_v5 = vld [vmem:[#allocation2 + $0x78] sm:$0xff]  }
   0xf   :  { %805 = vmatprep.subr.bf16.mxu1 %v986_v0  ;;  %821 = vmatprep.mubr.msk.bf16.mxu1 %vm987_vm0, %v986_v0  ;;  %v919_v6 = vld [vmem:[#allocation2 + $0x70] sm:$0xff]   ;;  %v914_v7 = vld [vmem:[#allocation2 + $0x18] sm:$0xff]   ;;  %v920_v8 = vld [vmem:[#allocation2 + $0x68] sm:$0xff]   ;;  %v264_v58 = vshrl.u32 %v263_v57, 7  ;;  %v244_v59 = vunpack.c.l.bf16 %v1014_v4 }
  0x10   :  { %786 = vmatpush3.bf16.msra.mxu0 %v910_v1  ;;  %806 = vmatpush3.bf16.msra.mxu1 %v918_v5  ;;  %v915_v9 = vld [vmem:[#allocation2 + $0x10] sm:$0xff]   ;;  %v916_v10 = vld [vmem:[#allocation2 + $0x8] sm:$0xff]   ;;  %v917_v11 = vld [vmem:[#allocation2] sm:$0xff]  }
  0x11   :  { %787 = vmatprep.subr.bf16.mxu0 %v986_v0  ;;  %807 = vmatprep.subr.bf16.mxu1 %v986_v0  ;;  %v42_v12 = vld [vmem:[%s1076_s0] sm:$0xff]  ;;  %v922_v15 = vld [vmem:[#allocation2 + $0x58] sm:$0xff]   ;;  %v923_v16 = vld [vmem:[#allocation2 + $0x50] sm:$0xff]   ;;  %v265_v60 = vsub.s32 0, %v264_v58 }
  0x12   :  { %v43_v13 = vpack.c.bf16 %v42_v12, %v42_v12  ;;  %v921_v14 = vld [vmem:[#allocation2 + $0x60] sm:$0xff]   ;;  %v924_v17 = vld [vmem:[#allocation2 + $0x48] sm:$0xff]   ;;  %v926_v19 = vld [vmem:[#allocation2 + $0xb8] sm:$0xff]  }
  0x13   :  { %v925_v18 = vld [vmem:[#allocation2 + $0x40] sm:$0xff]   ;;  %v927_v20 = vld [vmem:[#allocation2 + $0xb0] sm:$0xff]   ;;  %v928_v21 = vld [vmem:[#allocation2 + $0xa8] sm:$0xff]   ;;  %v266_v61 = vrot.slane %v244_v59, %v265_v60 }
  0x14   :  { %788 = vmatpush3.bf16.msra.mxu0 %v911_v2  ;;  %808 = vmatpush3.bf16.msra.mxu1 %v919_v6  ;;  %v929_v22 = vld [vmem:[#allocation2 + $0xa0] sm:$0xff]   ;;  %v930_v23 = vld [vmem:[#allocation2 + $0x98] sm:$0xff]   ;;  %v931_v24 = vld [vmem:[#allocation2 + $0x90] sm:$0xff]  }
  0x15   :  { %789 = vmatprep.subr.bf16.mxu0 %v986_v0  ;;  %809 = vmatprep.subr.bf16.mxu1 %v986_v0  ;;  %v932_v25 = vld [vmem:[#allocation2 + $0x88] sm:$0xff]   ;;  %v933_v35 = vld [vmem:[#allocation2 + $0x80] sm:$0xff]   ;;  %v934_v36 = vld [vmem:[#allocation2 + $0xf8] sm:$0xff]  }
  0x16   :  { %v935_v37 = vld [vmem:[#allocation2 + $0xf0] sm:$0xff]   ;;  %v936_v38 = vld [vmem:[#allocation2 + $0xe8] sm:$0xff]   ;;  %v937_v39 = vld [vmem:[#allocation2 + $0xe0] sm:$0xff]  }
  0x17   :  { %v938_v40 = vld [vmem:[#allocation2 + $0xd8] sm:$0xff]   ;;  %v939_v41 = vld [vmem:[#allocation2 + $0xd0] sm:$0xff]   ;;  %v940_v48 = vld [vmem:[#allocation2 + $0xc8] sm:$0xff]  }
  0x18   :  { %790 = vmatpush3.bf16.msra.mxu0 %v912_v3  ;;  %810 = vmatpush3.bf16.msra.mxu1 %v920_v8  ;;  %v941_v49 = vld [vmem:[#allocation2 + $0xc0] sm:$0xff]   ;;  %v942_v50 = vld [vmem:[#allocation2 + $0x138] sm:$0xff]   ;;  %v943_v51 = vld [vmem:[#allocation2 + $0x130] sm:$0xff]  }
  0x19   :  { %791 = vmatprep.subr.bf16.mxu0 %v986_v0  ;;  %811 = vmatprep.subr.bf16.mxu1 %v986_v0  ;;  %v944_v52 = vld [vmem:[#allocation2 + $0x128] sm:$0xff]   ;;  %v945_v53 = vld [vmem:[#allocation2 + $0x120] sm:$0xff]   ;;  %v946_v54 = vld [vmem:[#allocation2 + $0x118] sm:$0xff]  }
  0x1a   :  { %v947_v55 = vld [vmem:[#allocation2 + $0x110] sm:$0xff]   ;;  %v948_v56 = vld [vmem:[#allocation2 + $0x108] sm:$0xff]   ;;  %v950_v8 = vld [vmem:[#allocation2 + $0x178] sm:$0xff]  }
  0x1b   :  { %v955_v12 = vld [vmem:[#allocation2 + $0x150] sm:$0xff]  }
  0x1c   :  { %792 = vmatpush3.bf16.msra.mxu0 %v1014_v4  ;;  %812 = vmatpush3.bf16.msra.mxu1 %v921_v14  ;;  %v952_v4 = vld [vmem:[#allocation2 + $0x168] sm:$0xff]  }
  0x1d   :  { %793 = vmatprep.subr.bf16.mxu0 %v986_v0  ;;  %813 = vmatprep.subr.bf16.mxu1 %v986_v0 }
  0x20   :  { %794 = vmatpush3.bf16.msra.mxu0 %v914_v7  ;;  %814 = vmatpush3.bf16.msra.mxu1 %v922_v15  ;;  %v949_v7 = vld [vmem:[#allocation2 + $0x100] sm:$0xff]  }
  0x21   :  { %795 = vmatprep.subr.bf16.mxu0 %v986_v0  ;;  %815 = vmatprep.subr.bf16.mxu1 %v986_v0 }
  0x24   :  { %796 = vmatpush3.bf16.msra.mxu0 %v915_v9  ;;  %816 = vmatpush3.bf16.msra.mxu1 %v923_v16  ;;  %v951_v9 = vld [vmem:[#allocation2 + $0x170] sm:$0xff]  }
  0x25   :  { %797 = vmatprep.subr.bf16.mxu0 %v986_v0  ;;  %817 = vmatprep.subr.bf16.mxu1 %v986_v0 }
  0x28   :  { %798 = vmatpush3.bf16.msra.mxu0 %v916_v10  ;;  %818 = vmatpush3.bf16.msra.mxu1 %v924_v17  ;;  %v953_v10 = vld [vmem:[#allocation2 + $0x160] sm:$0xff]  }
  0x29   :  { %799 = vmatprep.subr.bf16.mxu0 %v986_v0  ;;  %819 = vmatprep.subr.bf16.mxu1 %v986_v0 }
  0x2c   :  { %800 = vmatpush3.bf16.msra.mxu0 %v917_v11  ;;  %820 = vmatpush3.bf16.msra.mxu1 %v925_v18  ;;  %v954_v11 = vld [vmem:[#allocation2 + $0x158] sm:$0xff]  }
  0x2d   :  { %825 = vmatprep.subr.bf16.mxu0 %v986_v0  ;;  %845 = vmatprep.subr.bf16.mxu1 %v986_v0 }
  0x2f   :  { %802 = vmatmul.mubr.bf16.vlgmr.msra.gmra.mxu0 %v43_v13 }
  0x30   :  { %841 = vmatprep.mubr.msk.bf16.mxu0 %vm987_vm0, %v986_v0  ;;  %826 = vmatpush3.bf16.msra.mxu0 %v926_v19  ;;  %v956_v19 = vld [vmem:[#allocation2 + $0x148] sm:$0xff]  }
  0x31   :  { %827 = vmatprep.subr.bf16.mxu0 %v986_v0 }
  0x34   :  { %828 = vmatpush3.bf16.msra.mxu0 %v927_v20  ;;  %v957_v20 = vld [vmem:[#allocation2 + $0x140] sm:$0xff]  }
  0x35   :  { %829 = vmatprep.subr.bf16.mxu0 %v986_v0 }
  0x38   :  { %830 = vmatpush3.bf16.msra.mxu0 %v928_v21 }
  0x39   :  { %831 = vmatprep.subr.bf16.mxu0 %v986_v0 }
  0x3c   :  { %832 = vmatpush3.bf16.msra.mxu0 %v929_v22 }
  0x3d   :  { %833 = vmatprep.subr.bf16.mxu0 %v986_v0 }
  0x40   :  { %834 = vmatpush3.bf16.msra.mxu0 %v930_v23 }
  0x41   :  { %835 = vmatprep.subr.bf16.mxu0 %v986_v0 }
  0x44   :  { %836 = vmatpush3.bf16.msra.mxu0 %v931_v24 }
  0x45   :  { %837 = vmatprep.subr.bf16.mxu0 %v986_v0 }
  0x48   :  { %838 = vmatpush3.bf16.msra.mxu0 %v932_v25 }
  0x49   :  { %839 = vmatprep.subr.bf16.mxu0 %v986_v0 }
  0x4c   :  { %840 = vmatpush3.bf16.msra.mxu0 %v933_v35 }
  0x4d   :  { %865 = vmatprep.subr.bf16.mxu0 %v986_v0 }
  0xef   :  { %v126_v26 = vpop.f32.mrf.mxu0 }
  0xf0   :  { %v133_v27 = vmul.f32 1.442695, %v126_v26  ;;  %vm132_vm1 = vcmp.gt.f32.partialorder %v126_v26, 0.0 }
  0xf1   :  { %v803_v28 = vpop.f32.mrf.mxu0 }
  0xf2   :  { %959 = vpow2.f32 %v133_v27 }
  0xf3   :  { %v129_v29 = vpop.f32.mrf.mxu0 }
  0xf5   :  { %v804_v30 = vpop.f32.mrf.mxu0 }
  0xff   :  { %v960_v31 = vpop.eup %959 }
 0x100   :  { %v690_v32 = vadd.f32 -1.0, %v960_v31 }
 0x102   :  { %v136_v33 = vsel %vm132_vm1, %v126_v26, %v690_v32 }
 0x103   :  { %v137_v34 = vpack.c.bf16 %v136_v33, %v136_v33 }
 0x105   :  { %822 = vmatmul.mubr.bf16.vlgmr.msra.gmra.mxu1 %v137_v34 }
 0x106   :  { %861 = vmatprep.mubr.msk.bf16.mxu1 %vm987_vm0, %v986_v0  ;;  %846 = vmatpush3.bf16.msra.mxu1 %v934_v36 }
 0x107   :  { %847 = vmatprep.subr.bf16.mxu1 %v986_v0 }
 0x10a   :  { %848 = vmatpush3.bf16.msra.mxu1 %v935_v37 }
 0x10b   :  { %849 = vmatprep.subr.bf16.mxu1 %v986_v0 }
 0x10e   :  { %850 = vmatpush3.bf16.msra.mxu1 %v936_v38 }
 0x10f   :  { %851 = vmatprep.subr.bf16.mxu1 %v986_v0 }
 0x112   :  { %852 = vmatpush3.bf16.msra.mxu1 %v937_v39 }
 0x113   :  { %853 = vmatprep.subr.bf16.mxu1 %v986_v0 }
 0x116   :  { %854 = vmatpush3.bf16.msra.mxu1 %v938_v40 }
 0x117   :  { %855 = vmatprep.subr.bf16.mxu1 %v986_v0 }
 0x11a   :  { %856 = vmatpush3.bf16.msra.mxu1 %v939_v41 }
 0x11b   :  { %857 = vmatprep.subr.bf16.mxu1 %v986_v0 }
 0x11e   :  { %858 = vmatpush3.bf16.msra.mxu1 %v940_v48 }
 0x11f   :  { %859 = vmatprep.subr.bf16.mxu1 %v986_v0 }
 0x122   :  { %860 = vmatpush3.bf16.msra.mxu1 %v941_v49 }
 0x123   :  { %885 = vmatprep.subr.bf16.mxu1 %v986_v0 }
 0x1c5   :  { %v237_v42 = vpop.f32.mrf.mxu1 }
 0x1c6   :  { %v243_v43 = vmax.f32 %v237_v42, 0.0 }
 0x1c7   :  { %v823_v44 = vpop.f32.mrf.mxu1 }
 0x1c8   :  { %v245_v45 = vpack.c.bf16 %v243_v43, %v243_v43 }
 0x1c9   :  { %v240_v46 = vpop.f32.mrf.mxu1 }
 0x1ca   :  { %842 = vmatmul.mubr.bf16.vlgmr.msra.gmra.mxu0 %v245_v45 }
 0x1cb   :  { %v824_v47 = vpop.f32.mrf.mxu1  ;;  %881 = vmatprep.mubr.msk.bf16.mxu0 %vm987_vm0, %v986_v0  ;;  %866 = vmatpush3.bf16.msra.mxu0 %v942_v50 }
 0x1cc   :  { %867 = vmatprep.subr.bf16.mxu0 %v986_v0 }
 0x1cf   :  { %868 = vmatpush3.bf16.msra.mxu0 %v943_v51 }
 0x1d0   :  { %869 = vmatprep.subr.bf16.mxu0 %v986_v0 }
 0x1d3   :  { %870 = vmatpush3.bf16.msra.mxu0 %v944_v52 }
 0x1d4   :  { %871 = vmatprep.subr.bf16.mxu0 %v986_v0 }
 0x1d7   :  { %872 = vmatpush3.bf16.msra.mxu0 %v945_v53 }
 0x1d8   :  { %873 = vmatprep.subr.bf16.mxu0 %v986_v0 }
 0x1db   :  { %874 = vmatpush3.bf16.msra.mxu0 %v946_v54 }
 0x1dc   :  { %875 = vmatprep.subr.bf16.mxu0 %v986_v0 }
 0x1df   :  { %876 = vmatpush3.bf16.msra.mxu0 %v947_v55 }
 0x1e0   :  { %877 = vmatprep.subr.bf16.mxu0 %v986_v0 }
 0x1e3   :  { %878 = vmatpush3.bf16.msra.mxu0 %v948_v56 }
 0x1e4   :  { %879 = vmatprep.subr.bf16.mxu0 %v986_v0 }
 0x1e7   :  { %880 = vmatpush3.bf16.msra.mxu0 %v949_v7 }
 0x28a   :  { %v349_v62 = vpop.f32.mrf.mxu0 }
 0x28b   :  { %v350_v63 = vadd.f32 %v349_v62, %v266_v61 }
 0x28c   :  { %v843_v1 = vpop.f32.mrf.mxu0 }
 0x28d   :  { %v355_v2 = vmax.f32 %v350_v63, 0.0 }
 0x28e   :  { %v352_v3 = vpop.f32.mrf.mxu0 }
 0x28f   :  { %v356_v5 = vpack.c.bf16 %v355_v2, %v355_v2 }
 0x290   :  { %v844_v6 = vpop.f32.mrf.mxu0 }
 0x291   :  { %862 = vmatmul.mubr.bf16.vlgmr.msra.gmra.mxu1 %v356_v5 }
 0x292   :  { %901 = vmatprep.mubr.msk.bf16.mxu1 %vm987_vm0, %v986_v0  ;;  %886 = vmatpush3.bf16.msra.mxu1 %v950_v8 }
 0x293   :  { %887 = vmatprep.subr.bf16.mxu1 %v986_v0 }
 0x296   :  { %888 = vmatpush3.bf16.msra.mxu1 %v951_v9 }
 0x297   :  { %889 = vmatprep.subr.bf16.mxu1 %v986_v0 }
 0x29a   :  { %890 = vmatpush3.bf16.msra.mxu1 %v952_v4 }
 0x29b   :  { %891 = vmatprep.subr.bf16.mxu1 %v986_v0 }
 0x29e   :  { %892 = vmatpush3.bf16.msra.mxu1 %v953_v10 }
 0x29f   :  { %893 = vmatprep.subr.bf16.mxu1 %v986_v0 }
 0x2a2   :  { %894 = vmatpush3.bf16.msra.mxu1 %v954_v11 }
 0x2a3   :  { %895 = vmatprep.subr.bf16.mxu1 %v986_v0 }
 0x2a6   :  { %896 = vmatpush3.bf16.msra.mxu1 %v955_v12 }
 0x2a7   :  { %897 = vmatprep.subr.bf16.mxu1 %v986_v0 }
 0x2aa   :  { %898 = vmatpush3.bf16.msra.mxu1 %v956_v19 }
 0x2ab   :  { %899 = vmatprep.subr.bf16.mxu1 %v986_v0 }
 0x2ae   :  { %900 = vmatpush3.bf16.msra.mxu1 %v957_v20 }
 0x351   :  { %v456_v13 = vpop.f32.mrf.mxu1 }
 0x352   :  { %v462_v14 = vmax.f32 %v456_v13, 0.0 }
 0x353   :  { %v863_v15 = vpop.f32.mrf.mxu1 }
 0x354   :  { %v463_v16 = vpack.c.bf16 %v462_v14, %v462_v14 }
 0x355   :  { %v459_v17 = vpop.f32.mrf.mxu1 }
 0x356   :  { %882 = vmatmul.mubr.bf16.vlgmr.msra.gmra.mxu0 %v463_v16 }
 0x357   :  { %v864_v18 = vpop.f32.mrf.mxu1 }
 0x416   :  { %v563_v21 = vpop.f32.mrf.mxu0 }
 0x417   :  { %v564_v22 = vadd.f32 %v563_v21, %v355_v2 }
 0x418   :  { %v883_v23 = vpop.f32.mrf.mxu0 }
 0x419   :  { %v569_v24 = vmax.f32 %v564_v22, 0.0 }
 0x41a   :  { %v566_v25 = vpop.f32.mrf.mxu0 }
 0x41b   :  { %v570_v26 = vpack.c.bf16 %v569_v24, %v569_v24 }
 0x41c   :  { %v884_v27 = vpop.f32.mrf.mxu0 }
 0x41d   :  { %902 = vmatmul.mubr.bf16.vlgmr.msra.gmra.mxu1 %v570_v26 }
 0x4dd   :  { %v670_v28 = vpop.f32.mrf.mxu1 }
 0x4de   :  { %676 = vst [vmem:[%s1078_s2] sm:$0xff] %v670_v28 }
 0x4df   :  { %v903_v29 = vpop.f32.mrf.mxu1 }
 0x4e1   :  { %v673_v30 = vpop.f32.mrf.mxu1 }
 0x4e3   :  { %v904_v31 = vpop.f32.mrf.mxu1 }
 0x4e4   :  { %681 = vsyncpa [#allocation3], 1 }

</bundles_post_ra>
